<compile_context>
chip_gen: v5e
topology: v5e:2x2
jax: 0.10.0
libtpu: 0.0.40
codegen_flags: <defaults>
</compile_context>

<pallas_src>
import functools

import jax
import jax.numpy as jnp
from jax import lax
from jax.experimental import pallas as pl
from jax.experimental.pallas import tpu as pltpu

EPS = 1e-9            # DICE default epsilon, forwarded to BatchNorm1d
LANE = 128
VMEM_BUDGET_BYTES = 32 * 1024 * 1024   # budget for the 4 big double-buffered tiles


def dice_kernel(x_ref, gamma_ref, beta_ref, alpha_ref, o_ref, *, eps):
    # (N, TILE_D) tile; compute in f32 regardless of storage dtype.
    x = x_ref[...].astype(jnp.float32)
    n = x.shape[0]
    inv_n = 1.0 / n

    # Single-sweep per-channel batch statistics (biased variance, as BN training).
    s1 = jnp.sum(x, axis=0, keepdims=True)          # (1, TILE_D)
    s2 = jnp.sum(x * x, axis=0, keepdims=True)      # (1, TILE_D)
    mean = s1 * inv_n
    var = jnp.maximum(s2 * inv_n - mean * mean, 0.0)  # clamp tiny negative cancellation
    inv_std = lax.rsqrt(var + eps)

    # Fold the BN affine into per-channel scale/shift (cheap (1, TILE_D) math),
    # so the (N, TILE_D) path is a single multiply-add.
    scale = gamma_ref[...] * inv_std                # (1, TILE_D)
    shift = beta_ref[...] - mean * scale            # (1, TILE_D)
    x_hat = x * scale + shift                       # (N, TILE_D)

    # sigmoid(x) = 0.5 * tanh(0.5 x) + 0.5  -> transcendental stays on the EUP.
    x_p = 0.5 * jnp.tanh(0.5 * x_hat) + 0.5

    # alpha*(1-x_p)*x + x_p*x  ==  x * (alpha + x_p*(1-alpha))
    alpha = alpha_ref[...]                          # (1, TILE_D)
    gate = alpha + x_p * (1.0 - alpha)
    o_ref[...] = (x * gate).astype(o_ref.dtype)


def _round_up(v, m):
    return (v + m - 1) // m * m


def _choose_tile_d(n_rows, d, x_itemsize, out_itemsize):
    # 2 double-buffered input tiles + 2 double-buffered output tiles of
    # (n_rows, tile_d) must fit the VMEM budget (param rows are negligible).
    per_lane_bytes = 2 * n_rows * x_itemsize + 2 * n_rows * out_itemsize
    max_tile = max(LANE, (VMEM_BUDGET_BYTES // per_lane_bytes) // LANE * LANE)
    return min(_round_up(d, LANE), max_tile)


def dice_forward(x, gamma, beta, alphas, *, eps=EPS):
    n, d = x.shape
    out_dtype = x.dtype

    tile_d = _choose_tile_d(n, d, x.dtype.itemsize, jnp.dtype(out_dtype).itemsize)
    d_pad = _round_up(d, tile_d)
    pad = d_pad - d

    if pad:
        x = jnp.pad(x, ((0, 0), (0, pad)))
    gamma2 = jnp.pad(gamma.astype(jnp.float32), (0, pad)).reshape(1, d_pad)
    beta2 = jnp.pad(beta.astype(jnp.float32), (0, pad)).reshape(1, d_pad)
    alpha2 = jnp.pad(alphas.astype(jnp.float32), (0, pad)).reshape(1, d_pad)

    grid = (d_pad // tile_d,)
    x_spec = pl.BlockSpec((n, tile_d), lambda j: (0, j))
    row_spec = pl.BlockSpec((1, tile_d), lambda j: (0, j))

    out = pl.pallas_call(
        functools.partial(dice_kernel, eps=eps),
        out_shape=jax.ShapeDtypeStruct((n, d_pad), out_dtype),
        grid=grid,
        in_specs=[x_spec, row_spec, row_spec, row_spec],
        out_specs=x_spec,
        compiler_params=pltpu.CompilerParams(
            dimension_semantics=("parallel",),      # shard D-tiles across TCs (v7x)
            vmem_limit_bytes=48 * 1024 * 1024,
        ),
    )(x, gamma2, beta2, alpha2)

    if pad:
        out = out[:, :d]
    return out

# TODO(synk): training-mode BatchNorm1d also updates running_mean/running_var
# buffers; only the forward output is reproduced here.


def dice_reference(x, gamma, beta, alphas, *, eps=EPS):
    x = x.astype(jnp.float32)
    mean = jnp.mean(x, axis=0, keepdims=True)
    var = jnp.mean((x - mean) ** 2, axis=0, keepdims=True)
    x_hat = (x - mean) / jnp.sqrt(var + eps) * gamma[None, :] + beta[None, :]
    x_p = jax.nn.sigmoid(x_hat)
    return alphas[None, :] * (1.0 - x_p) * x + x_p * x


if __name__ == "__main__":
    batch, embedding_dims = 8, 32

    key = jax.random.PRNGKey(0)
    kx, ka = jax.random.split(key)
    x = jax.random.normal(kx, (batch, embedding_dims), dtype=jnp.float32)

    # PyTorch __init__: BN weight = ones, BN bias = zeros, alphas = zeros.
    # Keep gamma/beta at defaults; use deterministic nonzero alphas so the
    # gating path is actually exercised.
    gamma = jnp.ones((embedding_dims,), dtype=jnp.float32)
    beta = jnp.zeros((embedding_dims,), dtype=jnp.float32)
    alphas = 0.1 * jax.random.normal(ka, (embedding_dims,), dtype=jnp.float32)

    out = dice_forward(x, gamma, beta, alphas)
    out = jax.block_until_ready(out)

    ref = dice_reference(x, gamma, beta, alphas)
    assert out.shape == (batch, embedding_dims)
    assert jnp.allclose(out, ref, atol=1e-5, rtol=1e-4), "mismatch vs reference"

    print("KERNEL_OK")
</pallas_src>

<mosaic_0001>
module attributes {stable_mosaic.version = 11 : i64} {
  func.func @dice_kernel(%arg0: i32, %arg1: memref<8x128xf32, #tpu.memory_space<vmem>>, %arg2: memref<1x128xf32, #tpu.memory_space<vmem>>, %arg3: memref<1x128xf32, #tpu.memory_space<vmem>>, %arg4: memref<1x128xf32, #tpu.memory_space<vmem>>, %arg5: memref<8x128xf32, #tpu.memory_space<vmem>>) attributes {dimension_semantics = [#tpu.dimension_semantics<parallel>], iteration_bounds = array<i64: 1>, scalar_prefetch = 0 : i64, scratch_operands = 0 : i64, tpu.core_type = #tpu.core_type<tc>, window_params = [{transform_indices = @transform_0, window_bounds = array<i64: 8, 128>}, {transform_indices = @transform_1, window_bounds = array<i64: 1, 128>}, {transform_indices = @transform_2, window_bounds = array<i64: 1, 128>}, {transform_indices = @transform_3, window_bounds = array<i64: 1, 128>}, {transform_indices = @transform_4, window_bounds = array<i64: 8, 128>}]} {
    %c0 = arith.constant 0 : index
    %c0_0 = arith.constant 0 : index
    %0 = vector.load %arg1[%c0, %c0_0] : memref<8x128xf32, #tpu.memory_space<vmem>>, vector<8x128xf32>
    %cst = arith.constant dense<0.000000e+00> : vector<128xf32>
    %1 = vector.multi_reduction <add>, %0, %cst [0] : vector<8x128xf32> to vector<128xf32>
    %2 = vector.shape_cast %1 : vector<128xf32> to vector<1x128xf32>
    %3 = arith.mulf %0, %0 : vector<8x128xf32>
    %cst_1 = arith.constant dense<0.000000e+00> : vector<128xf32>
    %4 = vector.multi_reduction <add>, %3, %cst_1 [0] : vector<8x128xf32> to vector<128xf32>
    %5 = vector.shape_cast %4 : vector<128xf32> to vector<1x128xf32>
    %cst_2 = arith.constant 1.250000e-01 : f32
    %6 = vector.broadcast %cst_2 : f32 to vector<1x128xf32>
    %7 = arith.mulf %2, %6 : vector<1x128xf32>
    %cst_3 = arith.constant 1.250000e-01 : f32
    %8 = vector.broadcast %cst_3 : f32 to vector<1x128xf32>
    %9 = arith.mulf %5, %8 : vector<1x128xf32>
    %10 = arith.mulf %7, %7 : vector<1x128xf32>
    %11 = arith.subf %9, %10 : vector<1x128xf32>
    %cst_4 = arith.constant 0.000000e+00 : f32
    %12 = vector.broadcast %cst_4 : f32 to vector<1x128xf32>
    %13 = arith.maximumf %11, %12 : vector<1x128xf32>
    %cst_5 = arith.constant 9.99999971E-10 : f32
    %14 = vector.broadcast %cst_5 : f32 to vector<1x128xf32>
    %15 = arith.addf %13, %14 : vector<1x128xf32>
    %16 = math.rsqrt %15 : vector<1x128xf32>
    %c0_6 = arith.constant 0 : index
    %c0_7 = arith.constant 0 : index
    %17 = vector.load %arg2[%c0_6, %c0_7] : memref<1x128xf32, #tpu.memory_space<vmem>>, vector<1x128xf32>
    %18 = arith.mulf %17, %16 : vector<1x128xf32>
    %c0_8 = arith.constant 0 : index
    %c0_9 = arith.constant 0 : index
    %19 = vector.load %arg3[%c0_8, %c0_9] : memref<1x128xf32, #tpu.memory_space<vmem>>, vector<1x128xf32>
    %20 = arith.mulf %7, %18 : vector<1x128xf32>
    %21 = arith.subf %19, %20 : vector<1x128xf32>
    %22 = vector.broadcast %18 : vector<1x128xf32> to vector<8x128xf32>
    %23 = arith.mulf %0, %22 : vector<8x128xf32>
    %24 = vector.broadcast %21 : vector<1x128xf32> to vector<8x128xf32>
    %25 = arith.addf %23, %24 : vector<8x128xf32>
    %cst_10 = arith.constant 5.000000e-01 : f32
    %26 = vector.broadcast %cst_10 : f32 to vector<8x128xf32>
    %27 = arith.mulf %26, %25 : vector<8x128xf32>
    %28 = math.tanh %27 : vector<8x128xf32>
    %cst_11 = arith.constant 5.000000e-01 : f32
    %29 = vector.broadcast %cst_11 : f32 to vector<8x128xf32>
    %30 = arith.mulf %29, %28 : vector<8x128xf32>
    %cst_12 = arith.constant 5.000000e-01 : f32
    %31 = vector.broadcast %cst_12 : f32 to vector<8x128xf32>
    %32 = arith.addf %30, %31 : vector<8x128xf32>
    %c0_13 = arith.constant 0 : index
    %c0_14 = arith.constant 0 : index
    %33 = vector.load %arg4[%c0_13, %c0_14] : memref<1x128xf32, #tpu.memory_space<vmem>>, vector<1x128xf32>
    %cst_15 = arith.constant 1.000000e+00 : f32
    %34 = vector.broadcast %cst_15 : f32 to vector<1x128xf32>
    %35 = arith.subf %34, %33 : vector<1x128xf32>
    %36 = vector.broadcast %35 : vector<1x128xf32> to vector<8x128xf32>
    %37 = arith.mulf %32, %36 : vector<8x128xf32>
    %38 = vector.broadcast %33 : vector<1x128xf32> to vector<8x128xf32>
    %39 = arith.addf %38, %37 : vector<8x128xf32>
    %40 = arith.mulf %0, %39 : vector<8x128xf32>
    %c0_16 = arith.constant 0 : index
    %c0_17 = arith.constant 0 : index
    %41 = vector.load %arg5[%c0_16, %c0_17] : memref<8x128xf32, #tpu.memory_space<vmem>>, vector<8x128xf32>
    tpu.vector_store %arg5[%c0_16, %c0_17], %40 {strides = array<i32>} : memref<8x128xf32, #tpu.memory_space<vmem>>, vector<8x128xf32>,
    return
  }
  func.func @transform_0(%arg0: i32) -> (i32, i32) {
    %c0_i32 = arith.constant 0 : i32
    %c0_i32_0 = arith.constant 0 : i32
    return %c0_i32, %arg0 : i32, i32
  }
  func.func @transform_1(%arg0: i32) -> (i32, i32) {
    %c0_i32 = arith.constant 0 : i32
    %c0_i32_0 = arith.constant 0 : i32
    return %c0_i32, %arg0 : i32, i32
  }
  func.func @transform_2(%arg0: i32) -> (i32, i32) {
    %c0_i32 = arith.constant 0 : i32
    %c0_i32_0 = arith.constant 0 : i32
    return %c0_i32, %arg0 : i32, i32
  }
  func.func @transform_3(%arg0: i32) -> (i32, i32) {
    %c0_i32 = arith.constant 0 : i32
    %c0_i32_0 = arith.constant 0 : i32
    return %c0_i32, %arg0 : i32, i32
  }
  func.func @transform_4(%arg0: i32) -> (i32, i32) {
    %c0_i32 = arith.constant 0 : i32
    %c0_i32_0 = arith.constant 0 : i32
    return %c0_i32, %arg0 : i32, i32
  }
}

</mosaic_0001>

<bundles_post_ra>
// kernel: tpu_custom_call.1
= control target key start
LH: loop header
LB: loop body
LE: loop exit
PB: predicated region body
PF: predicated region fallthrough
CT: control target
= control target key end

     0   :  { %9 = vsyncpa [#allocation3], 0  ;;  %s255_s0 = inlined_call_operand.hbm [shape: f32[8,128], index: 0, kind: input, shape index: {}]   ;;  %s256_s1 = inlined_call_operand.hbm [shape: f32[1,128], index: 1, kind: input, shape index: {}]   ;;  %s257_s2 = inlined_call_operand.vmem [shape: f32[1,128], index: 2, kind: input, shape index: {}]   ;;  %s258_s3 = inlined_call_operand.vmem [shape: f32[1,128], index: 3, kind: input, shape index: {}]   ;;  %s259_s4 = inlined_call_operand.hbm [shape: f32[8,128], index: 4, kind: output, shape index: {}]  }
   0x1   :  { %10 = vsyncpa [#allocation6], 0 }
   0x2   :  { %11 = vsyncpa [#allocation4], 0  ;;  %s17_s17 = sshll.u32 %s255_s0, 4  ;;  %s209_s18 = smov [#allocation2]   ;;  %s18_s17 = int_to_ptr.hbm [resolvable:$true] %s17_s17 }
   0x3   :  { %s19_s19 = sshll.u32 %s209_s18, 4  ;;  %s28_s22 = sshll.u32 %s256_s1, 4  ;;  %s20_s19 = int_to_ptr.vmem [resolvable:$true] %s19_s19  ;;  %s29_s22 = int_to_ptr.hbm [resolvable:$true] %s28_s22 }
   0x4   :  { %22 = dma.hbm_to_vmem [thread:$0]  %s18_s17, 128, %s20_s19, [#allocation3]  }
   0x5   :  { %s210_s23 = smov [#allocation5]  }
   0x6   :  { %s30_s24 = sshll.u32 %s210_s23, 4  ;;  %s31_s24 = int_to_ptr.vmem [resolvable:$true] %s30_s24 }
   0x7   :  { %33 = dma.hbm_to_vmem [thread:$0]  %s29_s22, 16, %s31_s24, [#allocation6]  }
   0x8   :  { %203 = dma.done.wait [#allocation3], 128  }
   0x9   :  { %204 = vsyncadd [#allocation3], 4294967168 }
   0xa   :  { %205 = dma.done.wait [#allocation6], 16  }
   0xb   :  { %206 = vsyncadd [#allocation6], 4294967280  ;;  %v46_v0 = vld [vmem:[#allocation2] sm:$0xff]  ;;  %v76_v26 = vld [vmem:[#allocation5] sm:$0x1]  ;;  %s112_s6 = sshll.u32 %s259_s4, 4  ;;  %s113_s6 = int_to_ptr.hbm [resolvable:$true] %s112_s6 }
   0xc   :  { %v47_v1 = vrot.slane %v46_v0, 4  ;;  %v53_v2 = vmul.f32 %v46_v0, %v46_v0  ;;  %v78_v29 = vld [vmem:[%s257_s2] sm:$0x1]  ;;  %s211_s2 = smov [#allocation7]  }
   0xd   :  { %v93_v37 = vld [vmem:[%s258_s3] sm:$0x1]  ;;  %s110_s29 = sshll.u32 %s211_s2, 4  ;;  %s111_s29 = int_to_ptr.vmem [resolvable:$true] %s110_s29 }
   0xe   :  { %v48_v3 = vadd.f32 %v47_v1, %v46_v0  ;;  %v54_v4 = vrot.slane %v53_v2, 4  ;;  %v94_v38 = vsub.f32 1.0, %v93_v37  ;;  %v126_v43 = vld [vmem:[%s258_s3] ss:$0 sm:$0xff] }
  0x10   :  { %v49_v5 = vrot.slane %v48_v3, 2  ;;  %v55_v6 = vadd.f32 %v54_v4, %v53_v2  ;;  %v96_v41 = vperm.slane %v94_v38, 0 }
  0x12   :  { %v50_v7 = vadd.f32 %v49_v5, %v48_v3  ;;  %v56_v8 = vrot.slane %v55_v6, 2 }
  0x14   :  { %v51_v9 = vrot.slane %v50_v7, 1  ;;  %v57_v10 = vadd.f32 %v56_v8, %v55_v6 }
  0x16   :  { %v52_v11 = vadd.f32 %v51_v9, %v50_v7  ;;  %v58_v12 = vrot.slane %v57_v10, 1 }
  0x18   :  { %v59_v13 = vadd.f32 %v58_v12, %v57_v10  ;;  %v60_v14 = vmul.f32 0.125, %v52_v11 }
  0x1a   :  { %v61_v15 = vmul.f32 0.125, %v59_v13  ;;  %v62_v16 = vmul.f32 %v60_v14, %v60_v14 }
  0x1c   :  { %v63_v17 = vsub.f32 %v61_v15, %v62_v16 }
  0x1e   :  { %v64_v18 = vmax.f32 %v63_v17, 0.0 }
  0x20   :  { %v65_v19 = vadd.f32 1e-09, %v64_v18 }
  0x22   :  { %127 = vrsqrt.f32 %v65_v19  ;;  %vm72_vm0 = vweird.f32 %v65_v19 }
  0x28   :  { %v128_v20 = vpop.eup %127 }
  0x29   :  { %v67_v21 = vmul.f32 %v128_v20, %v65_v19  ;;  %vm73_vm1 = vweird.f32 %v128_v20 }
  0x2a   :  { %vm74_vm2 = vmor %vm72_vm0, %vm73_vm1 }
  0x2b   :  { %v68_v22 = vmul.f32 %v128_v20, %v67_v21 }
  0x2d   :  { %v69_v23 = vmul.f32 0.5, %v68_v22 }
  0x2f   :  { %v70_v24 = vsub.f32 1.5, %v69_v23 }
  0x31   :  { %v71_v25 = vmul.f32 %v128_v20, %v70_v24 }
  0x33   :  { %v75_v27 = vsel %vm74_vm2, %v128_v20, %v71_v25 }
  0x34   :  { %v77_v28 = vmul.f32 %v76_v26, %v75_v27 }
  0x36   :  { %v79_v30 = vmul.f32 %v77_v28, %v60_v14  ;;  %v82_v31 = vperm.slane %v77_v28, 0 }
  0x38   :  { %v80_v32 = vsub.f32 %v78_v29, %v79_v30  ;;  %v84_v33 = vmul.f32 %v82_v31, %v46_v0 }
  0x3a   :  { %v86_v34 = vperm.slane %v80_v32, 0 }
  0x3c   :  { %v88_v35 = vadd.f32 %v86_v34, %v84_v33 }
  0x3e   :  { %v89_v36 = vmul.f32 0.5, %v88_v35 }
  0x40   :  { %129 = vtanh.f32 %v89_v36 }
  0x46   :  { %v130_v39 = vpop.eup %129 }
  0x47   :  { %v91_v40 = vmul.f32 0.5, %v130_v39 }
  0x49   :  { %v92_v42 = vadd.f32 0.5, %v91_v40 }
  0x4b   :  { %v98_v44 = vmul.f32 %v96_v41, %v92_v42 }
  0x4d   :  { %v102_v45 = vadd.f32 %v126_v43, %v98_v44 }
  0x4f   :  { %v103_v46 = vmul.f32 %v102_v45, %v46_v0 }
  0x51   :  { %104 = vst [vmem:[#allocation7] sm:$0xff] %v103_v46 }
  0x52   :  { %115 = dma.vmem_to_hbm [thread:$0]  %s111_s29, 128, %s113_s6, [#allocation4]  }
  0x53   :  { %207 = dma.done.wait [#allocation4], 128  }
  0x54   :  { %208 = vsyncadd [#allocation4], 4294967168 }
  0x55   :  { %120 = vsyncpa [#allocation3], 1 }
  0x56   :  { %121 = vsyncpa [#allocation6], 1 }
  0x57   :  { %122 = vsyncpa [#allocation4], 1 }

</bundles_post_ra>
